<compile_context>
chip_gen: v6e
topology: v6e:2x2x1
jax: 0.10.0
libtpu: 0.0.40
codegen_flags: <defaults>
</compile_context>

<pallas_src>
import functools

import jax
import jax.numpy as jnp
from jax.experimental import pallas as pl
from jax.experimental.pallas import tpu as pltpu


def _round_up(v, m):
    return ((v + m - 1) // m) * m


# ----------------------------------------------------------------------------
# Fused Pallas kernel: conv1 + ReLU + conv2 + masked log_softmax
# ----------------------------------------------------------------------------
def _fused_gcn_kernel(x_ref, a_ref, w1_ref, b1_ref, w2_ref, b2_ref, o_ref, *,
                      num_classes):
    a = a_ref[...]                                   # (Np, Np) bf16
    x = x_ref[...]                                   # (Np, Fp) bf16

    # ---- Layer 1:  relu( (A_hat @ X) @ W1 + b1 ) ---------------------------
    # Aggregate first: contract A_hat against the narrow feature dim.
    ax = jnp.dot(a, x, preferred_element_type=jnp.float32)           # (Np, Fp) f32
    h = jnp.dot(ax.astype(jnp.bfloat16), w1_ref[...],
                preferred_element_type=jnp.float32) + b1_ref[...]    # (Np, Hp) f32
    h = jnp.maximum(h, 0.0).astype(jnp.bfloat16)

    # ---- Layer 2:  A_hat @ (H @ W2) + b2 -----------------------------------
    # After 128-lane padding Hp == Cp, so contraction order is neutral here;
    # at real tiled sizes pick the order with the narrower resident
    # intermediate (N x min(Hp, Cp)).
    hw = jnp.dot(h, w2_ref[...], preferred_element_type=jnp.float32)  # (Np, Cp)
    z = jnp.dot(a, hw.astype(jnp.bfloat16),
                preferred_element_type=jnp.float32) + b2_ref[...]     # (Np, Cp) f32

    # ---- log_softmax over the valid class lanes only -----------------------
    col = jax.lax.broadcasted_iota(jnp.int32, z.shape, dimension=1)
    zm = jnp.where(col < num_classes, z, jnp.float32(-1e30))   # mask padded lanes
    m = jnp.max(zm, axis=1, keepdims=True)
    e = jnp.exp(zm - m)                 # padded lanes underflow to exactly 0
    lse = jnp.log(jnp.sum(e, axis=1, keepdims=True))
    # Full-lane-width (Cp multiple of 128) unmasked store.
    o_ref[...] = zm - m - lse


# ----------------------------------------------------------------------------
# One-time prepare: pad + cast static operands (A_hat, weights, biases)
# ----------------------------------------------------------------------------
def prepare_gcn(params, a_hat, num_classes):
    """Pad/cast A_hat and parameters once; reuse the result across forwards."""
    n = a_hat.shape[0]
    f, hidden = params["w1"].shape
    n_p = _round_up(n, 128)
    f_p = _round_up(f, 128)
    h_p = _round_up(hidden, 128)
    c_p = _round_up(num_classes, 128)

    # Zero pads are exact: zero rows/cols of A_hat and X contribute nothing;
    # zero W2 columns give zero logits in padded lanes (masked in softmax).
    a_p = jnp.zeros((n_p, n_p), jnp.bfloat16).at[:n, :n].set(
        a_hat.astype(jnp.bfloat16))
    w1_p = jnp.zeros((f_p, h_p), jnp.bfloat16).at[:f, :hidden].set(
        params["w1"].astype(jnp.bfloat16))
    b1_p = jnp.zeros((1, h_p), jnp.float32).at[:, :hidden].set(params["b1"])
    w2_p = jnp.zeros((h_p, c_p), jnp.bfloat16).at[:hidden, :num_classes].set(
        params["w2"].astype(jnp.bfloat16))
    b2_p = jnp.zeros((1, c_p), jnp.float32).at[:, :num_classes].set(params["b2"])

    prepared = {"a": a_p, "w1": w1_p, "b1": b1_p, "w2": w2_p, "b2": b2_p}
    return jax.tree_util.tree_map(jax.block_until_ready, prepared)


# ----------------------------------------------------------------------------
# Per-forward path: pad x only, single fused pallas_call
# ----------------------------------------------------------------------------
@functools.partial(jax.jit, static_argnames=("num_classes",))
def gcn_forward(prepared, x, *, num_classes):
    n, f = x.shape
    n_p = prepared["a"].shape[0]
    f_p = prepared["w1"].shape[0]
    h_p = prepared["w1"].shape[1]
    c_p = prepared["w2"].shape[1]

    # Only per-call padding: the node features.
    x_p = jnp.zeros((n_p, f_p), jnp.bfloat16).at[:n, :f].set(
        x.astype(jnp.bfloat16))

    flops = 2 * n_p * n_p * f_p + 2 * n_p * f_p * h_p \
        + 2 * n_p * h_p * c_p + 2 * n_p * n_p * c_p
    bytes_accessed = (
        x_p.size * 2 + prepared["a"].size * 2
        + prepared["w1"].size * 2 + prepared["b1"].size * 4
        + prepared["w2"].size * 2 + prepared["b2"].size * 4
        + n_p * c_p * 4)

    vmem = pl.BlockSpec(memory_space=pltpu.MemorySpace.VMEM)
    out_padded = pl.pallas_call(
        functools.partial(_fused_gcn_kernel, num_classes=num_classes),
        out_shape=jax.ShapeDtypeStruct((n_p, c_p), jnp.float32),
        in_specs=[vmem, vmem, vmem, vmem, vmem, vmem],
        out_specs=vmem,
        compiler_params=pltpu.CompilerParams(
            # Let XLA fuse the x pad/cast into the kernel's first operand.
            allow_input_fusion=[True, False, False, False, False, False]),
        cost_estimate=pl.CostEstimate(
            flops=flops,
            transcendentals=n_p * c_p + n_p,
            bytes_accessed=bytes_accessed),
    )(x_p, prepared["a"], prepared["w1"], prepared["b1"],
      prepared["w2"], prepared["b2"])

    # Padded rows / padded class lanes hold garbage by construction; slice off.
    return out_padded[:n, :num_classes]


# ----------------------------------------------------------------------------
# Glue: normalized dense adjacency + parameter init
# ----------------------------------------------------------------------------
def build_normalized_adjacency(edge_index, num_nodes):
    """Dense D^{-1/2}(A + I)D^{-1/2}; A_hat[dst, src] so A_hat @ X aggregates."""
    src = edge_index[0]
    dst = edge_index[1]
    loop = jnp.arange(num_nodes, dtype=edge_index.dtype)
    src = jnp.concatenate([src, loop])
    dst = jnp.concatenate([dst, loop])
    a = jnp.zeros((num_nodes, num_nodes), jnp.float32).at[dst, src].add(1.0)
    deg = jnp.sum(a, axis=1)  # in-degree incl. self-loop (matches PyG gcn_norm)
    d_inv_sqrt = jnp.where(deg > 0, 1.0 / jnp.sqrt(deg), 0.0)
    return d_inv_sqrt[:, None] * a * d_inv_sqrt[None, :]


def init_gcn_params(key, num_features, hidden_dim, num_classes):
    k1, k2 = jax.random.split(key)
    scale1 = 1.0 / jnp.sqrt(jnp.float32(num_features))
    scale2 = 1.0 / jnp.sqrt(jnp.float32(hidden_dim))
    return {
        "w1": jax.random.normal(k1, (num_features, hidden_dim), jnp.float32) * scale1,
        "b1": jnp.zeros((1, hidden_dim), jnp.float32),
        "w2": jax.random.normal(k2, (hidden_dim, num_classes), jnp.float32) * scale2,
        "b2": jnp.zeros((1, num_classes), jnp.float32),
    }


# ----------------------------------------------------------------------------
# Main
# ----------------------------------------------------------------------------
if __name__ == "__main__":
    num_nodes = 16
    num_features = 8
    hidden_dim = 32
    num_classes = 4

    key = jax.random.PRNGKey(0)
    kx, ke, kp = jax.random.split(key, 3)

    # Node features.
    x = jax.random.normal(kx, (num_nodes, num_features), jnp.float32)

    # Deterministic edge list: a ring graph (both directions) + a few extras.
    idx = jnp.arange(num_nodes, dtype=jnp.int32)
    ring_src = jnp.concatenate([idx, (idx + 1) % num_nodes])
    ring_dst = jnp.concatenate([(idx + 1) % num_nodes, idx])
    extra_src = jax.random.randint(ke, (8,), 0, num_nodes, jnp.int32)
    extra_dst = (extra_src + 5) % num_nodes
    edge_index = jnp.stack(
        [jnp.concatenate([ring_src, extra_src]),
         jnp.concatenate([ring_dst, extra_dst])],
        axis=0,
    )  # (2, 40)

    a_hat = build_normalized_adjacency(edge_index, num_nodes)
    params = init_gcn_params(kp, num_features, hidden_dim, num_classes)

    # One-time padding/cast of static operands (outside the per-call path).
    prepared = prepare_gcn(params, a_hat, num_classes)

    out = gcn_forward(prepared, x, num_classes=num_classes)
    jax.block_until_ready(out)

    assert out.shape == (num_nodes, num_classes)
    assert bool(jnp.all(jnp.isfinite(out)))
    # rows of log_softmax exponentiate-and-sum to 1
    row_sums = jnp.sum(jnp.exp(out), axis=1)
    assert bool(jnp.all(jnp.abs(row_sums - 1.0) < 1e-4))

    print("KERNEL_OK")
</pallas_src>

<mosaic_0001>
module attributes {stable_mosaic.version = 11 : i64} {
  func.func @_fused_gcn_kernel(%arg0: memref<128x128xbf16, #tpu.memory_space<vmem>>, %arg1: memref<128x128xbf16, #tpu.memory_space<vmem>>, %arg2: memref<128x128xbf16, #tpu.memory_space<vmem>>, %arg3: memref<1x128xf32, #tpu.memory_space<vmem>>, %arg4: memref<128x128xbf16, #tpu.memory_space<vmem>>, %arg5: memref<1x128xf32, #tpu.memory_space<vmem>>, %arg6: memref<128x128xf32, #tpu.memory_space<vmem>>) attributes {dimension_semantics = [], scalar_prefetch = 0 : i64, scratch_operands = 0 : i64, tpu.core_type = #tpu.core_type<tc>} {
    %c0 = arith.constant 0 : index
    %c0_0 = arith.constant 0 : index
    %0 = vector.load %arg1[%c0, %c0_0] : memref<128x128xbf16, #tpu.memory_space<vmem>>, vector<128x128xbf16>
    %c0_1 = arith.constant 0 : index
    %c0_2 = arith.constant 0 : index
    %1 = vector.load %arg0[%c0_1, %c0_2] : memref<128x128xbf16, #tpu.memory_space<vmem>>, vector<128x128xbf16>
    %cst = arith.constant dense<0.000000e+00> : vector<128x128xf32>
    %2 = tpu.matmul %0, %1, %cst {dimension_numbers = #tpu.dot_dimension_numbers<[1], [0], [0], [1], [0, 0, 1, 1], [], []>} : vector<128x128xbf16>, vector<128x128xbf16>, vector<128x128xf32> -> vector<128x128xf32>
    %3 = arith.truncf %2 : vector<128x128xf32> to vector<128x128xbf16>
    %c0_3 = arith.constant 0 : index
    %c0_4 = arith.constant 0 : index
    %4 = vector.load %arg2[%c0_3, %c0_4] : memref<128x128xbf16, #tpu.memory_space<vmem>>, vector<128x128xbf16>
    %cst_5 = arith.constant dense<0.000000e+00> : vector<128x128xf32>
    %5 = tpu.matmul %3, %4, %cst_5 {dimension_numbers = #tpu.dot_dimension_numbers<[1], [0], [0], [1], [0, 0, 1, 1], [], []>} : vector<128x128xbf16>, vector<128x128xbf16>, vector<128x128xf32> -> vector<128x128xf32>
    %c0_6 = arith.constant 0 : index
    %c0_7 = arith.constant 0 : index
    %6 = vector.load %arg3[%c0_6, %c0_7] : memref<1x128xf32, #tpu.memory_space<vmem>>, vector<1x128xf32>
    %7 = vector.broadcast %6 : vector<1x128xf32> to vector<128x128xf32>
    %8 = arith.addf %5, %7 : vector<128x128xf32>
    %cst_8 = arith.constant 0.000000e+00 : f32
    %9 = vector.broadcast %cst_8 : f32 to vector<128x128xf32>
    %10 = arith.maximumf %8, %9 : vector<128x128xf32>
    %11 = arith.truncf %10 : vector<128x128xf32> to vector<128x128xbf16>
    %c0_9 = arith.constant 0 : index
    %c0_10 = arith.constant 0 : index
    %12 = vector.load %arg4[%c0_9, %c0_10] : memref<128x128xbf16, #tpu.memory_space<vmem>>, vector<128x128xbf16>
    %cst_11 = arith.constant dense<0.000000e+00> : vector<128x128xf32>
    %13 = tpu.matmul %11, %12, %cst_11 {dimension_numbers = #tpu.dot_dimension_numbers<[1], [0], [0], [1], [0, 0, 1, 1], [], []>} : vector<128x128xbf16>, vector<128x128xbf16>, vector<128x128xf32> -> vector<128x128xf32>
    %14 = arith.truncf %13 : vector<128x128xf32> to vector<128x128xbf16>
    %cst_12 = arith.constant dense<0.000000e+00> : vector<128x128xf32>
    %15 = tpu.matmul %0, %14, %cst_12 {dimension_numbers = #tpu.dot_dimension_numbers<[1], [0], [0], [1], [0, 0, 1, 1], [], []>} : vector<128x128xbf16>, vector<128x128xbf16>, vector<128x128xf32> -> vector<128x128xf32>
    %c0_13 = arith.constant 0 : index
    %c0_14 = arith.constant 0 : index
    %16 = vector.load %arg5[%c0_13, %c0_14] : memref<1x128xf32, #tpu.memory_space<vmem>>, vector<1x128xf32>
    %17 = vector.broadcast %16 : vector<1x128xf32> to vector<128x128xf32>
    %18 = arith.addf %15, %17 : vector<128x128xf32>
    %19 = tpu.iota {dimensions = array<i32: 1>} : vector<128x128xi32>
    %c4_i32 = arith.constant 4 : i32
    %20 = vector.broadcast %c4_i32 : i32 to vector<128x128xi32>
    %21 = arith.cmpi slt, %19, %20 : vector<128x128xi32>
    %cst_15 = arith.constant -1.000000e+30 : f32
    %22 = vector.broadcast %cst_15 : f32 to vector<128x128xf32>
    %23 = arith.select %21, %18, %22 : vector<128x128xi1>, vector<128x128xf32>
    %cst_16 = arith.constant dense<0xFF800000> : vector<128xf32>
    %24 = vector.multi_reduction <maximumf>, %23, %cst_16 [1] : vector<128x128xf32> to vector<128xf32>
    %25 = vector.shape_cast %24 : vector<128xf32> to vector<128x1xf32>
    %26 = vector.broadcast %25 : vector<128x1xf32> to vector<128x128xf32>
    %27 = arith.subf %23, %26 : vector<128x128xf32>
    %28 = math.exp %27 : vector<128x128xf32>
    %cst_17 = arith.constant dense<0.000000e+00> : vector<128xf32>
    %29 = vector.multi_reduction <add>, %28, %cst_17 [1] : vector<128x128xf32> to vector<128xf32>
    %30 = vector.shape_cast %29 : vector<128xf32> to vector<128x1xf32>
    %31 = math.log %30 : vector<128x1xf32>
    %32 = vector.broadcast %25 : vector<128x1xf32> to vector<128x128xf32>
    %33 = arith.subf %23, %32 : vector<128x128xf32>
    %34 = vector.broadcast %31 : vector<128x1xf32> to vector<128x128xf32>
    %35 = arith.subf %33, %34 : vector<128x128xf32>
    %c0_18 = arith.constant 0 : index
    %c0_19 = arith.constant 0 : index
    %36 = vector.load %arg6[%c0_18, %c0_19] : memref<128x128xf32, #tpu.memory_space<vmem>>, vector<128x128xf32>
    tpu.vector_store %arg6[%c0_18, %c0_19], %35 {strides = array<i32>} : memref<128x128xf32, #tpu.memory_space<vmem>>, vector<128x128xf32>,
    return
  }
}

</mosaic_0001>

<bundles_post_ra>
// kernel: gcn_forward.2
= control target key start
LH: loop header
LB: loop body
LE: loop exit
PB: predicated region body
PF: predicated region fallthrough
CT: control target
= control target key end

     0   :  { %s1783_s0 = inlined_call_operand.hbm [shape: bf16[128,128], index: 0, kind: input, shape index: {}]   ;;  %s1784_s1 = inlined_call_operand.hbm [shape: bf16[128,128], index: 1, kind: input, shape index: {}]   ;;  %s1785_s2 = inlined_call_operand.vmem [shape: f32[1,128], index: 2, kind: input, shape index: {}]   ;;  %s1786_s3 = inlined_call_operand.hbm [shape: bf16[128,128], index: 3, kind: input, shape index: {}]   ;;  %s1787_s4 = inlined_call_operand.vmem [shape: f32[1,128], index: 4, kind: input, shape index: {}]   ;;  %s1788_s5 = inlined_call_operand.vmem [shape: bf16[16,8], index: 5, kind: input, shape index: {}]   ;;  %s1789_s6 = inlined_call_operand.<no memory space> [shape: bf16[], index: 6, kind: input, shape index: {}]   ;;  %s1790_s7 = inlined_call_operand.vmem [shape: f32[128,128], index: 7, kind: output, shape index: {}]  }
   0x1   :  { %v12_v0 = vstv %s1789_s6 }
   0x2   :  { %v13_v1 = vunpack.i.l.bf16 %v12_v0 }
   0x3   :  { %17 = vsyncpa [#allocation8], 0 }
   0x4   :  { %18 = vsyncpa [#allocation10], 0  ;;  %s1512_s26 = smov [#allocation9]   ;;  %s1513_s28 = smov [#allocation7]  }
   0x5   :  { %s38_s27 = sshll.u32 %s1512_s26, 4  ;;  %s26_s29 = sshll.u32 %s1513_s28, 4  ;;  %s39_s27 = int_to_ptr.vmem [resolvable:$true] %s38_s27  ;;  %s27_s29 = int_to_ptr.vmem [resolvable:$true] %s26_s29 }
   0x6   :  { %s1456_s30 = scalar_lea.vmem %s39_s27, 1024  ;;  %p1461_p1 = scmp.lt.s32.totalorder %s39_s27, %s39_s27 }
   0x7   :  { %p1457_p0 = scmp.ne.s32.totalorder %s39_s27, %s1456_s30  ;;  %p1462_p2 = scmp.lt.s32.totalorder %s1456_s30, %s1456_s30 }
   0x9   :  { %p1463_p3 = por %p1462_p2, %p1461_p1 }
   0xb   :  { %p1464_p4 = pnand %p1463_p3, %p1457_p0 }
   0xd   :  { %1467 = shalt.err (!%p1464_p4)
}
   0xe   :  { %s1514_s8 = smov 64   ;;  %s1515_s9 = smov 4  }
   0xf   :  { %44 = dma.hbm_to_vmem [thread:$0]  %s1784_s1, 1024, %s39_s27, [#allocation10], %s1514_s8, %s1514_s8, %s1515_s9  }
  0x10   :  { %s1476_s11 = scalar_lea.vmem %s27_s29, 1024  ;;  %p1481_p6 = scmp.lt.s32.totalorder %s27_s29, %s27_s29 }
  0x11   :  { %p1477_p5 = scmp.ne.s32.totalorder %s27_s29, %s1476_s11  ;;  %p1482_p7 = scmp.lt.s32.totalorder %s1476_s11, %s1476_s11 }
  0x13   :  { %p1483_p8 = por %p1482_p7, %p1481_p6 }
  0x15   :  { %p1484_p9 = pnand %p1483_p8, %p1477_p5 }
  0x17   :  { %1487 = shalt.err (!%p1484_p9)
}
  0x18   :  { %32 = dma.hbm_to_vmem [thread:$0]  %s1783_s0, 1024, %s27_s29, [#allocation8], %s1514_s8, %s1514_s8, %s1515_s9  }
  0x19   :  { %s1516_s14 = smov [#allocation11]  }
  0x1a   :  { %s52_s15 = sshll.u32 %s1516_s14, 4  ;;  %s53_s15 = int_to_ptr.vmem [resolvable:$true] %s52_s15 }
  0x1b   :  { %s1496_s16 = scalar_lea.vmem %s53_s15, 1024  ;;  %p1501_p11 = scmp.lt.s32.totalorder %s53_s15, %s53_s15 }
  0x1c   :  { %p1497_p10 = scmp.ne.s32.totalorder %s53_s15, %s1496_s16  ;;  %p1502_p12 = scmp.lt.s32.totalorder %s1496_s16, %s1496_s16 }
  0x1e   :  { %p1503_p13 = por %p1502_p12, %p1501_p11 }
  0x20   :  { %p1504_p0 = pnand %p1503_p13, %p1497_p10 }
  0x22   :  { %1507 = shalt.err (!%p1504_p0)
}
  0x23   :  { %58 = dma.hbm_to_vmem [thread:$0]  %s1786_s3, 1024, %s53_s15, [#allocation10], %s1514_s8, %s1514_s8, %s1515_s9  }
  0x24   :  { %1508 = dma.done.wait [#allocation8], 1024  }
  0x25   :  { %1509 = vsyncadd [#allocation8], 4294966272 }
  0x26   :  { %1510 = dma.done.wait [#allocation10], 2048  }
  0x27   :  { %1511 = vsyncadd [#allocation10], 4294965248  ;;  %v1122_v2 = vpack.c.bf16 %v13_v1, %v13_v1  ;;  %v82_v3 = vlaneseq  ;;  %v79_v5 = vld [vmem:[%s1788_s5] sm:$0xff]   ;;  %v1517_v13 = vmov 0.0   ;;  %v1368_v20 = vld [vmem:[#allocation9 + $0x38] sm:$0xff]  }
  0x28   :  { %v80_v6 = vunpack.c.l.bf16 %v79_v5  ;;  %v102_v7 = vunpack.c.h.bf16 %v79_v5  ;;  %v1576_v8 = vld [vmem:[#allocation7] sm:$0xff]   ;;  %v1369_v21 = vld [vmem:[#allocation9 + $0x30] sm:$0xff]   ;;  %1250 = vmatprep.subr.bf16.mxu1 %v1368_v20  ;;  %v1370_v22 = vld [vmem:[#allocation9 + $0x28] sm:$0xff]  }
  0x29   :  { %1153 = vst [vmem:[#allocation12 + $0x38] sm:$0xff] %v1122_v2   ;;  %1123 = vst [vmem:[#allocation12 + $0x8] sm:$0xff] %v1122_v2   ;;  %v1570_v4 = vand.u32 127, %v82_v3  ;;  %1234 = vmatprep.mubr.bf16.mxu0 %v1576_v8  ;;  %1251 = vmatpush3.bf16.msra.mxu1 %v1368_v20  ;;  %v1371_v24 = vld [vmem:[#allocation9 + $0x20] sm:$0xff]   ;;  %v1372_v26 = vld [vmem:[#allocation9 + $0x18] sm:$0xff]  }
  0x2a   :  { %1128 = vst [vmem:[#allocation12 + $0x10] sm:$0xff] %v1122_v2   ;;  %1133 = vst [vmem:[#allocation12 + $0x18] sm:$0xff] %v1122_v2   ;;  %1252 = vmatprep.subr.bf16.mxu1 %v1369_v21  ;;  %v1579_v27 = vld [vmem:[#allocation7 + $0x8] sm:$0xff]   ;;  %v1581_v28 = vld [vmem:[#allocation7 + $0x10] sm:$0xff]  }
  0x2b   :  { %1138 = vst [vmem:[#allocation12 + $0x20] sm:$0xff] %v1122_v2   ;;  %1143 = vst [vmem:[#allocation12 + $0x28] sm:$0xff] %v1122_v2   ;;  %vm85_vm0 = vcmp.lt.s32.totalorder %v1570_v4, 8  ;;  %v1373_v29 = vld [vmem:[#allocation9 + $0x10] sm:$0xff]   ;;  %v1585_v30 = vld [vmem:[#allocation7 + $0x18] sm:$0xff]   ;;  %vm885_vm1 = vcmp.lt.s32.totalorder %v1570_v4, 4 }
  0x2c   :  { %1148 = vst [vmem:[#allocation12 + $0x30] sm:$0xff] %v1122_v2   ;;  %v86_v11 = vsel %vm85_vm0, %v80_v6, %v13_v1  ;;  %v108_v12 = vsel %vm85_vm0, %v102_v7, %v13_v1  ;;  %v1587_v31 = vld [vmem:[#allocation7 + $0x20] sm:$0xff]   ;;  %v1591_v32 = vld [vmem:[#allocation7 + $0x28] sm:$0xff]   ;;  %v1593_v33 = vld [vmem:[#allocation7 + $0x30] sm:$0xff]  }
  0x2d   :  { %v87_v14 = vpack.c.bf16 %v1517_v13, %v86_v11  ;;  %v110_v15 = vpack.c.bf16 %v1517_v13, %v108_v12  ;;  %1253 = vmatpush3.bf16.msra.mxu1 %v1369_v21  ;;  %v1597_v34 = vld [vmem:[#allocation7 + $0x38] sm:$0xff]   ;;  %v1374_v35 = vld [vmem:[#allocation9 + $0x8] sm:$0xff]   ;;  %v1375_v36 = vld [vmem:[#allocation9] sm:$0xff]  }
  0x2e   :  { %1254 = vmatprep.subr.bf16.mxu1 %v1370_v22  ;;  %v1376_v37 = vld [vmem:[#allocation11 + $0x38] sm:$0xff]   ;;  %v1377_v38 = vld [vmem:[#allocation11 + $0x30] sm:$0xff]   ;;  %v1378_v39 = vld [vmem:[#allocation11 + $0x28] sm:$0xff]  }
  0x2f   :  { %90 = vst [vmem:[#allocation12] sm:$0xf] %v87_v14  ;;  %113 = vst [vmem:[#allocation12 + $0x4] sm:$0xf] %v110_v15  ;;  %v1379_v40 = vld [vmem:[#allocation11 + $0x20] sm:$0xff]   ;;  %v1380_v41 = vld [vmem:[#allocation11 + $0x18] sm:$0xff]  }
  0x30   :  { %v1352_v9 = vld [vmem:[#allocation12 + $0x38] sm:$0xff]   ;;  %v1358_v23 = vld [vmem:[#allocation12 + $0x8] sm:$0xff]   ;;  %v1381_v2 = vld [vmem:[#allocation11 + $0x10] sm:$0xff]  }
  0x31   :  { %1218 = vmatprep.subr.bf16.mxu0 %v1352_v9  ;;  %v1356_v18 = vld [vmem:[#allocation12 + $0x18] sm:$0xff]   ;;  %v1357_v19 = vld [vmem:[#allocation12 + $0x10] sm:$0xff]   ;;  %1255 = vmatpush3.bf16.msra.mxu1 %v1370_v22  ;;  %v1382_v3 = vld [vmem:[#allocation11 + $0x8] sm:$0xff]  }
  0x32   :  { %1219 = vmatpush3.bf16.msra.mxu0 %v1352_v9  ;;  %v1354_v16 = vld [vmem:[#allocation12 + $0x28] sm:$0xff]   ;;  %v1355_v17 = vld [vmem:[#allocation12 + $0x20] sm:$0xff]   ;;  %1256 = vmatprep.subr.bf16.mxu1 %v1371_v24 }
  0x33   :  { %v1353_v10 = vld [vmem:[#allocation12 + $0x30] sm:$0xff]   ;;  %v1383_v5 = vld [vmem:[#allocation11] sm:$0xff]  }
  0x34   :  { %1220 = vmatprep.subr.bf16.mxu0 %v1353_v10  ;;  %v1101_v9 = vld [vmem:[%s1785_s2] ss:$0 sm:$0xff] }
  0x35   :  { %1257 = vmatpush3.bf16.msra.mxu1 %v1371_v24 }
  0x36   :  { %1221 = vmatpush3.bf16.msra.mxu0 %v1353_v10  ;;  %v1359_v25 = vld [vmem:[#allocation12] sm:$0xff]   ;;  %1258 = vmatprep.subr.bf16.mxu1 %v1372_v26 }
  0x37   :  { %1222 = vmatprep.subr.bf16.mxu0 %v1354_v16 }
  0x39   :  { %1259 = vmatpush3.bf16.msra.mxu1 %v1372_v26 }
  0x3a   :  { %1223 = vmatpush3.bf16.msra.mxu0 %v1354_v16  ;;  %1260 = vmatprep.subr.bf16.mxu1 %v1373_v29 }
  0x3b   :  { %1224 = vmatprep.subr.bf16.mxu0 %v1355_v17 }
  0x3d   :  { %1261 = vmatpush3.bf16.msra.mxu1 %v1373_v29 }
  0x3e   :  { %1225 = vmatpush3.bf16.msra.mxu0 %v1355_v17  ;;  %1262 = vmatprep.subr.bf16.mxu1 %v1374_v35 }
  0x3f   :  { %1226 = vmatprep.subr.bf16.mxu0 %v1356_v18 }
  0x41   :  { %1263 = vmatpush3.bf16.msra.mxu1 %v1374_v35 }
  0x42   :  { %1227 = vmatpush3.bf16.msra.mxu0 %v1356_v18  ;;  %1264 = vmatprep.subr.bf16.mxu1 %v1375_v36 }
  0x43   :  { %1228 = vmatprep.subr.bf16.mxu0 %v1357_v19 }
  0x45   :  { %1265 = vmatpush3.bf16.msra.mxu1 %v1375_v36 }
  0x46   :  { %1229 = vmatpush3.bf16.msra.mxu0 %v1357_v19 }
  0x47   :  { %1230 = vmatprep.subr.bf16.mxu0 %v1358_v23 }
  0x4a   :  { %1231 = vmatpush3.bf16.msra.mxu0 %v1358_v23 }
  0x4b   :  { %1232 = vmatprep.subr.bf16.mxu0 %v1359_v25 }
  0x4e   :  { %1233 = vmatpush3.bf16.msra.mxu0 %v1359_v25 }
  0x4f   :  { %1282 = vmatprep.subr.bf16.mxu0 %v1376_v37 }
  0x51   :  { %1235 = vmatmul.mubr.bf16.vlgmr.msra.gmra.mxu0 %v1579_v27 }
  0x52   :  { %1238 = vmatprep.mubr.bf16.mxu0 %v1581_v28  ;;  %1283 = vmatpush3.bf16.msra.mxu0 %v1376_v37 }
  0x53   :  { %1284 = vmatprep.subr.bf16.mxu0 %v1377_v38 }
  0x56   :  { %1285 = vmatpush3.bf16.msra.mxu0 %v1377_v38 }
  0x57   :  { %1286 = vmatprep.subr.bf16.mxu0 %v1378_v39 }
  0x59   :  { %1239 = vmatmul.mubr.bf16.gmra.mxu0 %v1585_v30 }
  0x5a   :  { %1242 = vmatprep.mubr.bf16.mxu0 %v1587_v31  ;;  %1287 = vmatpush3.bf16.msra.mxu0 %v1378_v39 }
  0x5b   :  { %1288 = vmatprep.subr.bf16.mxu0 %v1379_v40 }
  0x5e   :  { %1289 = vmatpush3.bf16.msra.mxu0 %v1379_v40 }
  0x5f   :  { %1290 = vmatprep.subr.bf16.mxu0 %v1380_v41 }
  0x61   :  { %1243 = vmatmul.mubr.bf16.gmra.mxu0 %v1591_v32 }
  0x62   :  { %1246 = vmatprep.mubr.bf16.mxu0 %v1593_v33  ;;  %1291 = vmatpush3.bf16.msra.mxu0 %v1380_v41 }
  0x63   :  { %1292 = vmatprep.subr.bf16.mxu0 %v1381_v2 }
  0x66   :  { %1293 = vmatpush3.bf16.msra.mxu0 %v1381_v2 }
  0x67   :  { %1294 = vmatprep.subr.bf16.mxu0 %v1382_v3 }
  0x69   :  { %1247 = vmatmul.mubr.bf16.gmra.mxu0 %v1597_v34 }
  0x6a   :  { %1295 = vmatpush3.bf16.msra.mxu0 %v1382_v3 }
  0x6b   :  { %1296 = vmatprep.subr.bf16.mxu0 %v1383_v5 }
  0x6e   :  { %1297 = vmatpush3.bf16.msra.mxu0 %v1383_v5 }
 0x111   :  { %v1236_v42 = vpop.f32.mrf.mxu0 }
 0x113   :  { %v347_v43 = vpop.f32.mrf.mxu0 }
 0x115   :  { %v1237_v44 = vpop.f32.mrf.mxu0 }
 0x116   :  { %v411_v47 = vpack.c.bf16 %v1237_v44, %v1236_v42 }
 0x117   :  { %v350_v45 = vpop.f32.mrf.mxu0 }
 0x118   :  { %v410_v46 = vpack.c.bf16 %v350_v45, %v347_v43 }
 0x119   :  { %v1240_v48 = vpop.f32.mrf.mxu0 }
 0x11a   :  { %1266 = vmatprep.mubr.bf16.mxu1 %v410_v46 }
 0x11b   :  { %v363_v49 = vpop.f32.mrf.mxu0  ;;  %1267 = vmatmul.mubr.bf16.vlgmr.msra.gmra.mxu1 %v411_v47 }
 0x11d   :  { %v1241_v50 = vpop.f32.mrf.mxu0 }
 0x11e   :  { %v413_v53 = vpack.c.bf16 %v1241_v50, %v1240_v48 }
 0x11f   :  { %v366_v51 = vpop.f32.mrf.mxu0 }
 0x120   :  { %v412_v52 = vpack.c.bf16 %v366_v51, %v363_v49 }
 0x121   :  { %v1244_v54 = vpop.f32.mrf.mxu0 }
 0x122   :  { %1270 = vmatprep.mubr.bf16.mxu1 %v412_v52 }
 0x123   :  { %v379_v55 = vpop.f32.mrf.mxu0  ;;  %1271 = vmatmul.mubr.bf16.gmra.mxu1 %v413_v53 }
 0x125   :  { %v1245_v56 = vpop.f32.mrf.mxu0 }
 0x126   :  { %v415_v59 = vpack.c.bf16 %v1245_v56, %v1244_v54 }
 0x127   :  { %v382_v57 = vpop.f32.mrf.mxu0 }
 0x128   :  { %v414_v58 = vpack.c.bf16 %v382_v57, %v379_v55 }
 0x129   :  { %v1248_v60 = vpop.f32.mrf.mxu0 }
 0x12a   :  { %1274 = vmatprep.mubr.bf16.mxu1 %v414_v58 }
 0x12b   :  { %v395_v61 = vpop.f32.mrf.mxu0  ;;  %1275 = vmatmul.mubr.bf16.gmra.mxu1 %v415_v59 }
 0x12d   :  { %v1249_v62 = vpop.f32.mrf.mxu0 }
 0x12e   :  { %v417_v1 = vpack.c.bf16 %v1249_v62, %v1248_v60 }
 0x12f   :  { %v398_v63 = vpop.f32.mrf.mxu0 }
 0x130   :  { %v416_v0 = vpack.c.bf16 %v398_v63, %v395_v61 }
 0x132   :  { %1278 = vmatprep.mubr.bf16.mxu1 %v416_v0 }
 0x133   :  { %1279 = vmatmul.mubr.bf16.gmra.mxu1 %v417_v1 }
 0x134   :  { %1330 = vmatprep.mubr.bf16.mxu1 %v1576_v8 }
 0x1db   :  { %v1268_v6 = vpop.f32.mrf.mxu1 }
 0x1dc   :  { %v532_v13 = vadd.f32 %v1268_v6, %v1101_v9 }
 0x1dd   :  { %v523_v7 = vpop.f32.mrf.mxu1 }
 0x1de   :  { %v524_v11 = vadd.f32 %v1101_v9, %v523_v7  ;;  %v588_v19 = vmax.f32 %v532_v13, 0.0 }
 0x1df   :  { %v1269_v10 = vpop.f32.mrf.mxu1 }
 0x1e0   :  { %v535_v12 = vadd.f32 %v1269_v10, %v1101_v9  ;;  %v586_v17 = vmax.f32 %v524_v11, 0.0 }
 0x1e1   :  { %v526_v8 = vpop.f32.mrf.mxu1 }
 0x1e2   :  { %v527_v14 = vadd.f32 %v1101_v9, %v526_v8  ;;  %v589_v15 = vmax.f32 %v535_v12, 0.0 }
 0x1e3   :  { %v1272_v16 = vpop.f32.mrf.mxu1 }
 0x1e4   :  { %v587_v18 = vmax.f32 %v527_v14, 0.0  ;;  %v603_v22 = vpack.c.bf16 %v589_v15, %v588_v19  ;;  %v548_v26 = vadd.f32 %v1272_v16, %v1101_v9 }
 0x1e5   :  { %v539_v20 = vpop.f32.mrf.mxu1 }
 0x1e6   :  { %v602_v21 = vpack.c.bf16 %v587_v18, %v586_v17  ;;  %v540_v24 = vadd.f32 %v1101_v9, %v539_v20  ;;  %v592_v40 = vmax.f32 %v548_v26, 0.0 }
 0x1e7   :  { %v1273_v23 = vpop.f32.mrf.mxu1 }
 0x1e8   :  { %v551_v25 = vadd.f32 %v1273_v23, %v1101_v9  ;;  %1298 = vmatprep.mubr.bf16.mxu0 %v602_v21  ;;  %v590_v38 = vmax.f32 %v540_v24, 0.0 }
 0x1e9   :  { %v542_v29 = vpop.f32.mrf.mxu1  ;;  %1299 = vmatmul.mubr.bf16.vlgmr.msra.gmra.mxu0 %v603_v22 }
 0x1ea   :  { %v543_v35 = vadd.f32 %v1101_v9, %v542_v29  ;;  %v593_v36 = vmax.f32 %v551_v25, 0.0 }
 0x1eb   :  { %v1276_v37 = vpop.f32.mrf.mxu1 }
 0x1ec   :  { %v591_v39 = vmax.f32 %v543_v35, 0.0  ;;  %v605_v43 = vpack.c.bf16 %v593_v36, %v592_v40  ;;  %v564_v47 = vadd.f32 %v1276_v37, %v1101_v9 }
 0x1ed   :  { %v555_v41 = vpop.f32.mrf.mxu1 }
 0x1ee   :  { %v604_v42 = vpack.c.bf16 %v591_v39, %v590_v38  ;;  %v556_v45 = vadd.f32 %v1101_v9, %v555_v41  ;;  %v596_v54 = vmax.f32 %v564_v47, 0.0  ;;  %v1118_v38 = vld [vmem:[%s1787_s4] ss:$0 sm:$0xff] }
 0x1ef   :  { %v1277_v44 = vpop.f32.mrf.mxu1 }
 0x1f0   :  { %v567_v46 = vadd.f32 %v1277_v44, %v1101_v9  ;;  %1302 = vmatprep.mubr.bf16.mxu0 %v604_v42  ;;  %v594_v52 = vmax.f32 %v556_v45, 0.0 }
 0x1f1   :  { %v558_v48 = vpop.f32.mrf.mxu1  ;;  %1303 = vmatmul.mubr.bf16.gmra.mxu0 %v605_v43 }
 0x1f2   :  { %v559_v49 = vadd.f32 %v1101_v9, %v558_v48  ;;  %v597_v50 = vmax.f32 %v567_v46, 0.0 }
 0x1f3   :  { %v1280_v51 = vpop.f32.mrf.mxu1 }
 0x1f4   :  { %v595_v53 = vmax.f32 %v559_v49, 0.0  ;;  %v607_v57 = vpack.c.bf16 %v597_v50, %v596_v54  ;;  %v580_v61 = vadd.f32 %v1280_v51, %v1101_v9 }
 0x1f5   :  { %v571_v55 = vpop.f32.mrf.mxu1 }
 0x1f6   :  { %v606_v56 = vpack.c.bf16 %v595_v53, %v594_v52  ;;  %v572_v59 = vadd.f32 %v1101_v9, %v571_v55  ;;  %v600_v3 = vmax.f32 %v580_v61, 0.0 }
 0x1f7   :  { %v1281_v58 = vpop.f32.mrf.mxu1 }
 0x1f8   :  { %v583_v60 = vadd.f32 %v1281_v58, %v1101_v9  ;;  %1306 = vmatprep.mubr.bf16.mxu0 %v606_v56  ;;  %v598_v1 = vmax.f32 %v572_v59, 0.0 }
 0x1f9   :  { %v574_v62 = vpop.f32.mrf.mxu1  ;;  %1307 = vmatmul.mubr.bf16.gmra.mxu0 %v607_v57 }
 0x1fa   :  { %v575_v63 = vadd.f32 %v1101_v9, %v574_v62  ;;  %v601_v0 = vmax.f32 %v583_v60, 0.0 }
 0x1fc   :  { %v599_v2 = vmax.f32 %v575_v63, 0.0  ;;  %v609_v6 = vpack.c.bf16 %v601_v0, %v600_v3 }
 0x1fe   :  { %v608_v5 = vpack.c.bf16 %v599_v2, %v598_v1 }
 0x200   :  { %1310 = vmatprep.mubr.bf16.mxu0 %v608_v5 }
 0x201   :  { %1311 = vmatmul.mubr.bf16.gmra.mxu0 %v609_v6 }
 0x2a9   :  { %v1300_v7 = vpop.f32.mrf.mxu0 }
 0x2ab   :  { %v708_v10 = vpop.f32.mrf.mxu0 }
 0x2ad   :  { %v1301_v11 = vpop.f32.mrf.mxu0 }
 0x2ae   :  { %v772_v36 = vpack.c.bf16 %v1301_v11, %v1300_v7 }
 0x2af   :  { %v711_v12 = vpop.f32.mrf.mxu0 }
 0x2b0   :  { %v771_v37 = vpack.c.bf16 %v711_v12, %v708_v10 }
 0x2b1   :  { %v1304_v13 = vpop.f32.mrf.mxu0 }
 0x2b3   :  { %v724_v8 = vpop.f32.mrf.mxu0 }
 0x2b5   :  { %v1305_v14 = vpop.f32.mrf.mxu0 }
 0x2b6   :  { %v774_v29 = vpack.c.bf16 %v1305_v14, %v1304_v13 }
 0x2b7   :  { %v727_v15 = vpop.f32.mrf.mxu0 }
 0x2b8   :  { %v773_v35 = vpack.c.bf16 %v727_v15, %v724_v8 }
 0x2b9   :  { %v1308_v16 = vpop.f32.mrf.mxu0 }
 0x2bb   :  { %v740_v17 = vpop.f32.mrf.mxu0 }
 0x2bd   :  { %v1309_v18 = vpop.f32.mrf.mxu0 }
 0x2be   :  { %v776_v25 = vpack.c.bf16 %v1309_v18, %v1308_v16 }
 0x2bf   :  { %v743_v9 = vpop.f32.mrf.mxu0 }
 0x2c0   :  { %v775_v26 = vpack.c.bf16 %v743_v9, %v740_v17 }
 0x2c1   :  { %v1312_v19 = vpop.f32.mrf.mxu0 }
 0x2c3   :  { %v756_v20 = vpop.f32.mrf.mxu0 }
 0x2c5   :  { %v1313_v21 = vpop.f32.mrf.mxu0 }
 0x2c6   :  { %v778_v22 = vpack.c.bf16 %v1313_v21, %v1312_v19 }
 0x2c7   :  { %v759_v23 = vpop.f32.mrf.mxu0 }
 0x2c8   :  { %v777_v24 = vpack.c.bf16 %v759_v23, %v756_v20  ;;  %1314 = vmatprep.subr.bf16.mxu1 %v778_v22 }
 0x2c9   :  { %1315 = vmatpush3.bf16.msra.mxu1 %v778_v22 }
 0x2ca   :  { %1316 = vmatprep.subr.bf16.mxu1 %v777_v24 }
 0x2cd   :  { %1317 = vmatpush3.bf16.msra.mxu1 %v777_v24 }
 0x2ce   :  { %1318 = vmatprep.subr.bf16.mxu1 %v776_v25 }
 0x2d1   :  { %1319 = vmatpush3.bf16.msra.mxu1 %v776_v25 }
 0x2d2   :  { %1320 = vmatprep.subr.bf16.mxu1 %v775_v26 }
 0x2d5   :  { %1321 = vmatpush3.bf16.msra.mxu1 %v775_v26 }
 0x2d6   :  { %1322 = vmatprep.subr.bf16.mxu1 %v774_v29 }
 0x2d9   :  { %1323 = vmatpush3.bf16.msra.mxu1 %v774_v29 }
 0x2da   :  { %1324 = vmatprep.subr.bf16.mxu1 %v773_v35 }
 0x2dd   :  { %1325 = vmatpush3.bf16.msra.mxu1 %v773_v35 }
 0x2de   :  { %1326 = vmatprep.subr.bf16.mxu1 %v772_v36 }
 0x2e1   :  { %1327 = vmatpush3.bf16.msra.mxu1 %v772_v36 }
 0x2e2   :  { %1328 = vmatprep.subr.bf16.mxu1 %v771_v37 }
 0x2e5   :  { %1329 = vmatpush3.bf16.msra.mxu1 %v771_v37 }
 0x2e8   :  { %1331 = vmatmul.mubr.bf16.vlgmr.msra.gmra.mxu1 %v1579_v27 }
 0x2e9   :  { %1334 = vmatprep.mubr.bf16.mxu1 %v1581_v28 }
 0x2f0   :  { %1335 = vmatmul.mubr.bf16.gmra.mxu1 %v1585_v30 }
 0x2f1   :  { %1338 = vmatprep.mubr.bf16.mxu1 %v1587_v31 }
 0x2f8   :  { %1339 = vmatmul.mubr.bf16.gmra.mxu1 %v1591_v32 }
 0x2f9   :  { %1342 = vmatprep.mubr.bf16.mxu1 %v1593_v33 }
 0x300   :  { %1343 = vmatmul.mubr.bf16.gmra.mxu1 %v1597_v34 }
 0x3a8   :  { %v1332_v39 = vpop.f32.mrf.mxu1 }
 0x3a9   :  { %v829_v27 = vadd.f32 %v1332_v39, %v1118_v38 }
 0x3aa   :  { %v820_v40 = vpop.f32.mrf.mxu1 }
 0x3ab   :  { %v821_v28 = vadd.f32 %v1118_v38, %v820_v40  ;;  %v888_v30 = vsel %vm885_vm1, %v829_v27, -1e+30 }
 0x3ac   :  { %906 = vmax.xlane.f32.xlu1 %v888_v30  ;;  %v1333_v31 = vpop.f32.mrf.mxu1 }
 0x3ad   :  { %v832_v32 = vadd.f32 %v1333_v31, %v1118_v38  ;;  %v886_v33 = vsel %vm885_vm1, %v821_v28, -1e+30 }
 0x3ae   :  { %v823_v34 = vpop.f32.mrf.mxu1  ;;  %902 = vmax.xlane.f32.xlu0 %v886_v33 }
 0x3af   :  { %v824_v41 = vadd.f32 %v1118_v38, %v823_v34  ;;  %v889_v42 = vsel %vm885_vm1, %v832_v32, -1e+30 }
 0x3b0   :  { %908 = vmax.xlane.f32.xlu1 %v889_v42  ;;  %v1336_v43 = vpop.f32.mrf.mxu1 }
 0x3b1   :  { %v845_v44 = vadd.f32 %v1336_v43, %v1118_v38  ;;  %v887_v45 = vsel %vm885_vm1, %v824_v41, -1e+30 }
 0x3b2   :  { %v836_v46 = vpop.f32.mrf.mxu1  ;;  %904 = vmax.xlane.f32.xlu0 %v887_v45 }
 0x3b3   :  { %v837_v48 = vadd.f32 %v1118_v38, %v836_v46  ;;  %v892_v50 = vsel %vm885_vm1, %v845_v44, -1e+30 }
 0x3b4   :  { %v1337_v47 = vpop.f32.mrf.mxu1 }
 0x3b5   :  { %v848_v49 = vadd.f32 %v1337_v47, %v1118_v38  ;;  %v890_v56 = vsel %vm885_vm1, %v837_v48, -1e+30 }
 0x3b6   :  { %v839_v51 = vpop.f32.mrf.mxu1  ;;  %914 = vmax.xlane.f32.xlu0 %v892_v50 }
 0x3b7   :  { %v840_v52 = vadd.f32 %v1118_v38, %v839_v51  ;;  %v893_v53 = vsel %vm885_vm1, %v848_v49, -1e+30 }
 0x3b8   :  { %916 = vmax.xlane.f32.xlu1 %v893_v53  ;;  %v1340_v54 = vpop.f32.mrf.mxu1 }
 0x3b9   :  { %v861_v55 = vadd.f32 %v1340_v54, %v1118_v38  ;;  %v891_v58 = vsel %vm885_vm1, %v840_v52, -1e+30 }
 0x3ba   :  { %v852_v57 = vpop.f32.mrf.mxu1  ;;  %910 = vmax.xlane.f32.xlu0 %v890_v56 }
 0x3bb   :  { %v853_v60 = vadd.f32 %v1118_v38, %v852_v57  ;;  %v896_v62 = vsel %vm885_vm1, %v861_v55, -1e+30 }
 0x3bc   :  { %v1341_v59 = vpop.f32.mrf.mxu1  ;;  %912 = vmax.xlane.f32.xlu1 %v891_v58 }
 0x3bd   :  { %v864_v61 = vadd.f32 %v1341_v59, %v1118_v38  ;;  %v1637_v3 = vsel %vm885_vm1, %v853_v60, -1e+30 }
 0x3be   :  { %v855_v63 = vpop.f32.mrf.mxu1  ;;  %922 = vmax.xlane.f32.xlu0 %v896_v62 }
 0x3bf   :  { %v856_v0 = vadd.f32 %v1118_v38, %v855_v63  ;;  %v897_v1 = vsel %vm885_vm1, %v864_v61, -1e+30 }
 0x3c0   :  { %v1344_v2 = vpop.f32.mrf.mxu1  ;;  %924 = vmax.xlane.f32.xlu1 %v897_v1 }
 0x3c1   :  { %v1642_v7 = vsel %vm885_vm1, %v856_v0, -1e+30  ;;  %v877_v11 = vadd.f32 %v1344_v2, %v1118_v38 }
 0x3c2   :  { %v868_v5 = vpop.f32.mrf.mxu1  ;;  %918 = vmax.xlane.f32.xlu0 %v1637_v3 }
 0x3c3   :  { %v869_v6 = vadd.f32 %v1118_v38, %v868_v5  ;;  %v1656_v16 = vsel %vm885_vm1, %v877_v11, -1e+30 }
 0x3c4   :  { %v1345_v10 = vpop.f32.mrf.mxu1  ;;  %920 = vmax.xlane.f32.xlu1 %v1642_v7 }
 0x3c5   :  { %v1647_v12 = vsel %vm885_vm1, %v869_v6, -1e+30  ;;  %v880_v14 = vadd.f32 %v1345_v10, %v1118_v38 }
 0x3c6   :  { %v871_v13 = vpop.f32.mrf.mxu1  ;;  %926 = vmax.xlane.f32.xlu0 %v1647_v12 }
 0x3c7   :  { %v872_v8 = vadd.f32 %v1118_v38, %v871_v13  ;;  %v1662_v17 = vsel %vm885_vm1, %v880_v14, -1e+30 }
 0x3c9   :  { %v1652_v15 = vsel %vm885_vm1, %v872_v8, -1e+30 }
 0x3ca   :  { %928 = vmax.xlane.f32.xlu1 %v1652_v15  ;;  %930 = vmax.xlane.f32.xlu0 %v1656_v16 }
 0x3ce   :  { %932 = vmax.xlane.f32.xlu1 %v1662_v17 }
 0x435   :  { %v907_v18 = vpop.xlane.xlu1 %906 }
 0x436   :  { %v1665_v9 = vsub.f32 %v888_v30, %v907_v18 }
 0x437   :  { %v903_v19 = vpop.xlane.xlu0 %902 }
 0x438   :  { %v954_v20 = vmul.f32 1.442695, %v1665_v9  ;;  %v1668_v21 = vsub.f32 %v886_v33, %v903_v19 }
 0x439   :  { %v909_v22 = vpop.xlane.xlu1 %908 }
 0x43a   :  { %1384 = vpow2.f32 %v954_v20  ;;  %v950_v23 = vmul.f32 1.442695, %v1668_v21  ;;  %v1671_v24 = vsub.f32 %v889_v42, %v909_v22 }
 0x43b   :  { %v905_v25 = vpop.xlane.xlu0 %904 }
 0x43c   :  { %v956_v4 = vmul.f32 1.442695, %v1671_v24  ;;  %v1674_v26 = vsub.f32 %v887_v45, %v905_v25  ;;  %1386 = vpow2.f32 %v950_v23 }
 0x43e   :  { %1388 = vpow2.f32 %v956_v4  ;;  %v952_v29 = vmul.f32 1.442695, %v1674_v26 }
 0x43f   :  { %v915_v35 = vpop.xlane.xlu0 %914 }
 0x440   :  { %v1677_v36 = vsub.f32 %v892_v50, %v915_v35  ;;  %1390 = vpow2.f32 %v952_v29 }
 0x441   :  { %v917_v37 = vpop.xlane.xlu1 %916 }
 0x442   :  { %v962_v38 = vmul.f32 1.442695, %v1677_v36  ;;  %v1680_v39 = vsub.f32 %v893_v53, %v917_v37 }
 0x443   :  { %v911_v27 = vpop.xlane.xlu0 %910 }
 0x444   :  { %1392 = vpow2.f32 %v962_v38  ;;  %v964_v40 = vmul.f32 1.442695, %v1680_v39  ;;  %v1683_v28 = vsub.f32 %v890_v56, %v911_v27 }
 0x445   :  { %v913_v30 = vpop.xlane.xlu1 %912 }
 0x446   :  { %1394 = vpow2.f32 %v964_v40  ;;  %v958_v31 = vmul.f32 1.442695, %v1683_v28  ;;  %v1686_v32 = vsub.f32 %v891_v58, %v913_v30 }
 0x447   :  { %v1385_v33 = vpop.eup %1384  ;;  %v923_v34 = vpop.xlane.xlu0 %922 }
 0x448   :  { %1396 = vpow2.f32 %v958_v31  ;;  %v960_v41 = vmul.f32 1.442695, %v1686_v32  ;;  %v1689_v42 = vsub.f32 %v896_v62, %v923_v34  ;;  %986 = vadd.xlane.f32.xlu0 %v1385_v33 }
 0x449   :  { %v925_v43 = vpop.xlane.xlu1 %924  ;;  %v1387_v44 = vpop.eup %1386 }
 0x44a   :  { %1398 = vpow2.f32 %v960_v41  ;;  %v970_v45 = vmul.f32 1.442695, %v1689_v42  ;;  %v1692_v46 = vsub.f32 %v897_v1, %v925_v43 }
 0x44b   :  { %v1389_v47 = vpop.eup %1388  ;;  %v919_v48 = vpop.xlane.xlu0 %918 }
 0x44c   :  { %1400 = vpow2.f32 %v970_v45  ;;  %v972_v49 = vmul.f32 1.442695, %v1692_v46  ;;  %v1696_v50 = vsub.f32 %v1637_v3, %v919_v48  ;;  %988 = vadd.xlane.f32.xlu1 %v1389_v47  ;;  %982 = vadd.xlane.f32.xlu0 %v1387_v44 }
 0x44d   :  { %v921_v51 = vpop.xlane.xlu1 %920  ;;  %v1391_v54 = vpop.eup %1390 }
 0x44e   :  { %1402 = vpow2.f32 %v972_v49  ;;  %v966_v52 = vmul.f32 1.442695, %v1696_v50  ;;  %v1700_v53 = vsub.f32 %v1642_v7, %v921_v51 }
 0x44f   :  { %v927_v55 = vpop.xlane.xlu0 %926 }
 0x450   :  { %1404 = vpow2.f32 %v966_v52  ;;  %v968_v56 = vmul.f32 1.442695, %v1700_v53  ;;  %v1704_v57 = vsub.f32 %v1647_v12, %v927_v55  ;;  %984 = vadd.xlane.f32.xlu1 %v1391_v54 }
 0x451   :  { %v1393_v58 = vpop.eup %1392 }
 0x452   :  { %1406 = vpow2.f32 %v968_v56  ;;  %v974_v59 = vmul.f32 1.442695, %v1704_v57  ;;  %994 = vadd.xlane.f32.xlu0 %v1393_v58 }
 0x453   :  { %v1395_v60 = vpop.eup %1394  ;;  %v929_v61 = vpop.xlane.xlu1 %928 }
 0x454   :  { %v931_v62 = vpop.xlane.xlu0 %930  ;;  %1408 = vpow2.f32 %v974_v59  ;;  %v1708_v63 = vsub.f32 %v1652_v15, %v929_v61  ;;  %996 = vadd.xlane.f32.xlu1 %v1395_v60 }
 0x455   :  { %v1711_v0 = vsub.f32 %v1656_v16, %v931_v62  ;;  %v1397_v1 = vpop.eup %1396 }
 0x456   :  { %v976_v2 = vmul.f32 1.442695, %v1708_v63  ;;  %990 = vadd.xlane.f32.xlu0 %v1397_v1 }
 0x457   :  { %v978_v3 = vmul.f32 1.442695, %v1711_v0  ;;  %v1399_v5 = vpop.eup %1398  ;;  %v933_v6 = vpop.xlane.xlu1 %932 }
 0x458   :  { %1410 = vpow2.f32 %v976_v2  ;;  %v1716_v7 = vsub.f32 %v1662_v17, %v933_v6  ;;  %992 = vadd.xlane.f32.xlu1 %v1399_v5 }
 0x459   :  { %v1401_v10 = vpop.eup %1400  ;;  %1412 = vpow2.f32 %v978_v3 }
 0x45a   :  { %v980_v11 = vmul.f32 1.442695, %v1716_v7  ;;  %1002 = vadd.xlane.f32.xlu0 %v1401_v10 }
 0x45b   :  { %v1403_v12 = vpop.eup %1402 }
 0x45c   :  { %1414 = vpow2.f32 %v980_v11  ;;  %1004 = vadd.xlane.f32.xlu1 %v1403_v12 }
 0x45d   :  { %v1405_v13 = vpop.eup %1404 }
 0x45e   :  { %998 = vadd.xlane.f32.xlu0 %v1405_v13 }
 0x45f   :  { %v1407_v8 = vpop.eup %1406 }
 0x460   :  { %1000 = vadd.xlane.f32.xlu1 %v1407_v8 }
 0x461   :  { %v1409_v14 = vpop.eup %1408 }
 0x462   :  { %1006 = vadd.xlane.f32.xlu0 %v1409_v14 }
 0x465   :  { %v1411_v15 = vpop.eup %1410 }
 0x466   :  { %v1413_v16 = vpop.eup %1412  ;;  %1008 = vadd.xlane.f32.xlu1 %v1411_v15 }
 0x467   :  { %1010 = vadd.xlane.f32.xlu0 %v1413_v16 }
 0x469   :  { %v1415_v17 = vpop.eup %1414 }
 0x46a   :  { %1012 = vadd.xlane.f32.xlu1 %v1415_v17 }
 0x4d1   :  { %v987_v18 = vpop.xlane.xlu0 %986 }
 0x4d2   :  { %1416 = vlog2.f32 %v987_v18 }
 0x4d5   :  { %v989_v19 = vpop.xlane.xlu1 %988  ;;  %v983_v20 = vpop.xlane.xlu0 %982 }
 0x4d6   :  { %1418 = vlog2.f32 %v989_v19 }
 0x4d7   :  { %1420 = vlog2.f32 %v983_v20 }
 0x4d9   :  { %v985_v22 = vpop.xlane.xlu1 %984 }
 0x4da   :  { %1422 = vlog2.f32 %v985_v22 }
 0x4db   :  { %v995_v23 = vpop.xlane.xlu0 %994 }
 0x4dc   :  { %1424 = vlog2.f32 %v995_v23 }
 0x4dd   :  { %v997_v25 = vpop.xlane.xlu1 %996 }
 0x4de   :  { %1426 = vlog2.f32 %v997_v25 }
 0x4df   :  { %v1417_v4 = vpop.eup %1416  ;;  %v991_v29 = vpop.xlane.xlu0 %990 }
 0x4e0   :  { %v1019_v35 = vmul.f32 0.6931472, %v1417_v4  ;;  %1428 = vlog2.f32 %v991_v29 }
 0x4e1   :  { %v993_v37 = vpop.xlane.xlu1 %992 }
 0x4e2   :  { %v1048_v38 = vsub.f32 %v1665_v9, %v1019_v35  ;;  %1430 = vlog2.f32 %v993_v37 }
 0x4e3   :  { %v1419_v27 = vpop.eup %1418  ;;  %v1003_v40 = vpop.xlane.xlu0 %1002 }
 0x4e4   :  { %v1421_v30 = vpop.eup %1420  ;;  %1064 = vst [vmem:[%s1790_s7 + $0x10] sm:$0xff] %v1048_v38  ;;  %v1021_v31 = vmul.f32 0.6931472, %v1419_v27  ;;  %1432 = vlog2.f32 %v1003_v40 }
 0x4e5   :  { %v1015_v33 = vmul.f32 0.6931472, %v1421_v30  ;;  %v1005_v34 = vpop.xlane.xlu1 %1004 }
 0x4e6   :  { %v1049_v41 = vsub.f32 %v1671_v24, %v1021_v31  ;;  %1434 = vlog2.f32 %v1005_v34 }
 0x4e7   :  { %v1423_v43 = vpop.eup %1422  ;;  %v1046_v44 = vsub.f32 %v1668_v21, %v1015_v33  ;;  %v999_v45 = vpop.xlane.xlu0 %998 }
 0x4e8   :  { %1065 = vst [vmem:[%s1790_s7 + $0x18] sm:$0xff] %v1049_v41  ;;  %v1017_v9 = vmul.f32 0.6931472, %v1423_v43  ;;  %1436 = vlog2.f32 %v999_v45 }
 0x4e9   :  { %v1425_v47 = vpop.eup %1424  ;;  %1062 = vst [vmem:[%s1790_s7] sm:$0xff] %v1046_v44  ;;  %v1001_v48 = vpop.xlane.xlu1 %1000 }
 0x4ea   :  { %v1047_v49 = vsub.f32 %v1674_v26, %v1017_v9  ;;  %v1027_v24 = vmul.f32 0.6931472, %v1425_v47  ;;  %1438 = vlog2.f32 %v1001_v48 }
 0x4eb   :  { %v1427_v51 = vpop.eup %1426  ;;  %v1007_v52 = vpop.xlane.xlu0 %1006 }
 0x4ec   :  { %1063 = vst [vmem:[%s1790_s7 + $0x8] sm:$0xff] %v1047_v49  ;;  %v1052_v21 = vsub.f32 %v1677_v36, %v1027_v24  ;;  %v1029_v54 = vmul.f32 0.6931472, %v1427_v51  ;;  %1440 = vlog2.f32 %v1007_v52 }
 0x4ed   :  { %v1429_v55 = vpop.eup %1428 }
 0x4ee   :  { %1068 = vst [vmem:[%s1790_s7 + $0x30] sm:$0xff] %v1052_v21  ;;  %v1053_v56 = vsub.f32 %v1680_v39, %v1029_v54  ;;  %v1023_v26 = vmul.f32 0.6931472, %v1429_v55 }
 0x4ef   :  { %v1431_v58 = vpop.eup %1430  ;;  %v1009_v59 = vpop.xlane.xlu1 %1008 }
 0x4f0   :  { %1069 = vst [vmem:[%s1790_s7 + $0x38] sm:$0xff] %v1053_v56  ;;  %v1050_v60 = vsub.f32 %v1683_v28, %v1023_v26  ;;  %v1025_v61 = vmul.f32 0.6931472, %v1431_v58  ;;  %1442 = vlog2.f32 %v1009_v59  ;;  %v1011_v36 = vpop.xlane.xlu0 %1010 }
 0x4f1   :  { %v1433_v62 = vpop.eup %1432  ;;  %1444 = vlog2.f32 %v1011_v36 }
 0x4f2   :  { %1066 = vst [vmem:[%s1790_s7 + $0x20] sm:$0xff] %v1050_v60  ;;  %v1051_v39 = vsub.f32 %v1686_v32, %v1025_v61  ;;  %v1035_v1 = vmul.f32 0.6931472, %v1433_v62 }
 0x4f3   :  { %v1435_v2 = vpop.eup %1434  ;;  %v1013_v3 = vpop.xlane.xlu1 %1012 }
 0x4f4   :  { %1067 = vst [vmem:[%s1790_s7 + $0x28] sm:$0xff] %v1051_v39  ;;  %v1056_v28 = vsub.f32 %v1689_v42, %v1035_v1  ;;  %v1037_v5 = vmul.f32 0.6931472, %v1435_v2  ;;  %1446 = vlog2.f32 %v1013_v3 }
 0x4f5   :  { %v1437_v6 = vpop.eup %1436 }
 0x4f6   :  { %1072 = vst [vmem:[%s1790_s7 + $0x50] sm:$0xff] %v1056_v28  ;;  %v1057_v10 = vsub.f32 %v1692_v46, %v1037_v5  ;;  %v1031_v11 = vmul.f32 0.6931472, %v1437_v6 }
 0x4f7   :  { %v1439_v32 = vpop.eup %1438 }
 0x4f8   :  { %1073 = vst [vmem:[%s1790_s7 + $0x58] sm:$0xff] %v1057_v10  ;;  %v1054_v12 = vsub.f32 %v1696_v50, %v1031_v11  ;;  %v1033_v13 = vmul.f32 0.6931472, %v1439_v32 }
 0x4f9   :  { %v1441_v8 = vpop.eup %1440 }
 0x4fa   :  { %1070 = vst [vmem:[%s1790_s7 + $0x40] sm:$0xff] %v1054_v12  ;;  %v1055_v42 = vsub.f32 %v1700_v53, %v1033_v13  ;;  %v1039_v14 = vmul.f32 0.6931472, %v1441_v8 }
 0x4fc   :  { %1071 = vst [vmem:[%s1790_s7 + $0x48] sm:$0xff] %v1055_v42  ;;  %v1058_v46 = vsub.f32 %v1704_v57, %v1039_v14 }
 0x4fd   :  { %v1443_v15 = vpop.eup %1442 }
 0x4fe   :  { %v1445_v16 = vpop.eup %1444  ;;  %1074 = vst [vmem:[%s1790_s7 + $0x60] sm:$0xff] %v1058_v46  ;;  %v1041_v50 = vmul.f32 0.6931472, %v1443_v15 }
 0x4ff   :  { %v1043_v17 = vmul.f32 0.6931472, %v1445_v16 }
 0x500   :  { %v1059_v18 = vsub.f32 %v1708_v63, %v1041_v50 }
 0x501   :  { %v1447_v19 = vpop.eup %1446  ;;  %v1060_v53 = vsub.f32 %v1711_v0, %v1043_v17 }
 0x502   :  { %1075 = vst [vmem:[%s1790_s7 + $0x68] sm:$0xff] %v1059_v18  ;;  %v1045_v20 = vmul.f32 0.6931472, %v1447_v19 }
 0x503   :  { %1076 = vst [vmem:[%s1790_s7 + $0x70] sm:$0xff] %v1060_v53 }
 0x504   :  { %v1061_v57 = vsub.f32 %v1716_v7, %v1045_v20 }
 0x506   :  { %1077 = vst [vmem:[%s1790_s7 + $0x78] sm:$0xff] %v1061_v57 }
 0x507   :  { %1082 = vsyncpa [#allocation8], 1 }
 0x508   :  { %1083 = vsyncpa [#allocation10], 1 }

</bundles_post_ra>
